<compile_context>
chip_gen: v5e
topology: v5e:2x2
jax: 0.10.0
libtpu: 0.0.40
codegen_flags: <defaults>
</compile_context>

<pallas_src>
import jax
import jax.numpy as jnp
from jax.experimental import pallas as pl
from jax.experimental.pallas import tpu as pltpu

_VMEM_LIMIT = 32 << 20  # explicit scoped-VMEM budget; leaves headroom on v7x (64 MiB/TC).


def _pick_tile(dim, pref, align):
    """Largest tile <= pref that divides dim and is `align`-aligned (or the full dim)."""
    if dim <= pref:
        return dim
    t = (pref // align) * align
    while t >= align:
        if dim % t == 0:
            return t
        t -= align
    # TODO(synk): pad + mask ragged last tiles instead of falling back to the full dim.
    return dim


# --------------------------------------------------------------------------------------
# Kernel 1: fold the bilinear weight with the per-batch feature vector on the MXU.
#   MT[b, j, o] = sum_i feature[b, i] * W_bil[o, i, j]      (emitted in bf16)
# --------------------------------------------------------------------------------------
def _mt_kernel(f_ref, w_ref, mt_ref):
    # f_ref : (B, F)     f32 lane-dense feature rows
    # w_ref : (F, THH)   f32 tile of the (F, H*H) reshaped bilinear weight
    # mt_ref: (B, THH)   bf16 output tile (f32 accumulation on the MXU, rounded once)
    acc = jnp.dot(f_ref[...], w_ref[...], preferred_element_type=jnp.float32)
    mt_ref[...] = acc.astype(mt_ref.dtype)


def _bilinear_fold(feature, w_bil):
    B, F = feature.shape
    H = w_bil.shape[0]
    HH = H * H
    # NOTE: in a real model this transposed/reshaped weight would be cached once
    # outside the step function, not rebuilt per call.
    wt2d = jnp.transpose(w_bil, (1, 2, 0)).reshape(F, HH)  # wt2d[i, j*H + o] = W[o, i, j]
    thh = _pick_tile(HH, 512, 128)
    mt_flat = pl.pallas_call(
        _mt_kernel,
        out_shape=jax.ShapeDtypeStruct((B, HH), jnp.bfloat16),
        grid_spec=pltpu.PrefetchScalarGridSpec(
            num_scalar_prefetch=0,
            grid=(HH // thh,),
            in_specs=[
                pl.BlockSpec((B, F), lambda i: (0, 0)),
                pl.BlockSpec((F, thh), lambda i: (0, i)),
            ],
            out_specs=pl.BlockSpec((B, thh), lambda i: (0, i)),
        ),
        compiler_params=pltpu.CompilerParams(
            dimension_semantics=("parallel",),
            vmem_limit_bytes=_VMEM_LIMIT,
        ),
    )(feature.astype(jnp.float32), wt2d.astype(jnp.float32))
    return mt_flat.reshape(B, H, H)  # MT[b, j(H_in), o(H_out)], bf16


def _prep_operands(lm_hidden, b_bil, w_dec):
    # bf16 MXU operands with f32 accumulation; decoder weight kept (V, H) — the MXU
    # handles the transposed operand via dot_general so no HBM transpose is needed.
    h_bf = lm_hidden.astype(jnp.bfloat16)
    wd_bf = w_dec.astype(jnp.bfloat16)
    b2 = b_bil.reshape(1, -1).astype(jnp.float32)
    return h_bf, b2, wd_bf


def _compute_fused(h_ref, mt_ref, b_ref):
    # fused[b, s, o] = sum_j h[b, s, j] * MT[b, j, o] + bias[o]   -> (TS, H) f32
    fused = jnp.dot(h_ref[0], mt_ref[0], preferred_element_type=jnp.float32)  # bf16 x bf16 MXU
    return fused + b_ref[...]


# --------------------------------------------------------------------------------------
# Kernel 2: logits.  grid = (B, S//TS, V//TV), V innermost (fused scratch carried over V).
# --------------------------------------------------------------------------------------
def _logits_kernel(mt_ref, b_ref, h_ref, wd_ref, o_ref, fused_sc):
    # mt_ref  : (1, H, H)   bf16 folded bilinear matrix for this batch element
    # b_ref   : (1, H)      f32 bilinear bias
    # h_ref   : (1, TS, H)  bf16 hidden tile
    # wd_ref  : (TV, H)     bf16 decoder weight tile (contract on H)
    # o_ref   : (1, TS, TV) f32 logits tile
    # fused_sc: (TS, H)     f32 scratch, computed on the first V step, reused afterwards
    @pl.when(pl.program_id(2) == 0)
    def _():
        fused_sc[...] = _compute_fused(h_ref, mt_ref, b_ref)

    logits = jax.lax.dot_general(
        fused_sc[...].astype(jnp.bfloat16), wd_ref[...],
        dimension_numbers=(((1,), (1,)), ((), ())),                   # (TS,H)x(TV,H)->(TS,TV)
        preferred_element_type=jnp.float32)                           # MXU
    o_ref[0] = logits.astype(o_ref.dtype)


def bilinear_lm_logits(lm_hidden, feature, w_bil, b_bil, w_dec, *, ts=None, tv=None):
    B, S, H = lm_hidden.shape
    V, H2 = w_dec.shape
    assert H2 == H and feature.shape[0] == B
    ts = _pick_tile(S, 128, 8) if ts is None else ts
    tv = _pick_tile(V, 1024, 128) if tv is None else tv
    assert S % ts == 0 and V % tv == 0

    mt = _bilinear_fold(feature, w_bil)                # (B, H, H) bf16
    h_bf, b2, wd_bf = _prep_operands(lm_hidden, b_bil, w_dec)

    return pl.pallas_call(
        _logits_kernel,
        out_shape=jax.ShapeDtypeStruct((B, S, V), jnp.float32),
        grid_spec=pltpu.PrefetchScalarGridSpec(
            num_scalar_prefetch=0,
            grid=(B, S // ts, V // tv),
            in_specs=[
                pl.BlockSpec((1, H, H), lambda b, s, v: (b, 0, 0)),
                pl.BlockSpec((1, H), lambda b, s, v: (0, 0)),
                pl.BlockSpec((1, ts, H), lambda b, s, v: (b, s, 0)),
                pl.BlockSpec((tv, H), lambda b, s, v: (v, 0)),
            ],
            out_specs=pl.BlockSpec((1, ts, tv), lambda b, s, v: (b, s, v)),
            scratch_shapes=[pltpu.VMEM((ts, H), jnp.float32)],
        ),
        compiler_params=pltpu.CompilerParams(
            dimension_semantics=("parallel", "parallel", "arbitrary"),
            vmem_limit_bytes=_VMEM_LIMIT,
        ),
    )(mt, b2, h_bf, wd_bf)


# --------------------------------------------------------------------------------------
# Kernel 3: fused loss.  Same grid as the logits kernel; online log-sum-exp across the
# V axis so the full logits never go to HBM.  Emits per-position masked NLL (B, S, 1).
# --------------------------------------------------------------------------------------
def _loss_kernel(mt_ref, b_ref, h_ref, wd_ref, lbl_ref, nll_ref,
                 fused_sc, m_sc, l_sc, pick_sc):
    v = pl.program_id(2)
    tv = wd_ref.shape[0]

    @pl.when(v == 0)
    def _():
        fused_sc[...] = _compute_fused(h_ref, mt_ref, b_ref)
        m_sc[...] = jnp.full_like(m_sc, -jnp.inf)
        l_sc[...] = jnp.zeros_like(l_sc)
        pick_sc[...] = jnp.zeros_like(pick_sc)

    logits = jax.lax.dot_general(
        fused_sc[...].astype(jnp.bfloat16), wd_ref[...],
        dimension_numbers=(((1,), (1,)), ((), ())),
        preferred_element_type=jnp.float32)                           # (TS, TV)

    # Online log-sum-exp across the V tiles.
    m_new = jnp.maximum(m_sc[...], jnp.max(logits, axis=-1, keepdims=True))
    alpha = jnp.exp(m_sc[...] - m_new)
    l_sc[...] = alpha * l_sc[...] + jnp.sum(jnp.exp(logits - m_new), axis=-1, keepdims=True)
    m_sc[...] = m_new

    # Gather the target-class logit from this V tile.
    labels = lbl_ref[0]                                               # (TS, 1) int32 (shifted)
    col = jax.lax.broadcasted_iota(jnp.int32, logits.shape, 1) + v * tv
    pick_sc[...] += jnp.sum(jnp.where(col == labels, logits, 0.0), axis=-1, keepdims=True)

    @pl.when(v == pl.num_programs(2) - 1)
    def _():
        lse = m_sc[...] + jnp.log(l_sc[...])
        valid = (labels != 0).astype(jnp.float32)                     # ignore_index=0
        nll_ref[0] = (lse - pick_sc[...]) * valid


def bilinear_lm_loss(lm_hidden, feature, lm_labels, w_bil, b_bil, w_dec, *, ts=None, tv=None):
    B, S, H = lm_hidden.shape
    V = w_dec.shape[0]
    ts = _pick_tile(S, 128, 8) if ts is None else ts
    tv = _pick_tile(V, 1024, 128) if tv is None else tv
    assert S % ts == 0 and V % tv == 0

    mt = _bilinear_fold(feature, w_bil)
    h_bf, b2, wd_bf = _prep_operands(lm_hidden, b_bil, w_dec)

    # Shift-and-pad labels: position p is scored against labels[p+1]; the padded 0 at the
    # last position reproduces logits[:, :-1] / labels[:, 1:] through ignore_index=0.
    shifted = jnp.concatenate(
        [lm_labels[:, 1:], jnp.zeros((B, 1), lm_labels.dtype)], axis=1).astype(jnp.int32)
    lbl3 = shifted[:, :, None]                                        # (B, S, 1)

    nll = pl.pallas_call(
        _loss_kernel,
        out_shape=jax.ShapeDtypeStruct((B, S, 1), jnp.float32),
        grid_spec=pltpu.PrefetchScalarGridSpec(
            num_scalar_prefetch=0,
            grid=(B, S // ts, V // tv),
            in_specs=[
                pl.BlockSpec((1, H, H), lambda b, s, v: (b, 0, 0)),
                pl.BlockSpec((1, H), lambda b, s, v: (0, 0)),
                pl.BlockSpec((1, ts, H), lambda b, s, v: (b, s, 0)),
                pl.BlockSpec((tv, H), lambda b, s, v: (v, 0)),
                pl.BlockSpec((1, ts, 1), lambda b, s, v: (b, s, 0)),
            ],
            out_specs=pl.BlockSpec((1, ts, 1), lambda b, s, v: (b, s, 0)),
            scratch_shapes=[
                pltpu.VMEM((ts, H), jnp.float32),   # fused
                pltpu.VMEM((ts, 1), jnp.float32),   # running max
                pltpu.VMEM((ts, 1), jnp.float32),   # running sum(exp)
                pltpu.VMEM((ts, 1), jnp.float32),   # picked target logit
            ],
        ),
        compiler_params=pltpu.CompilerParams(
            dimension_semantics=("parallel", "parallel", "arbitrary"),
            vmem_limit_bytes=_VMEM_LIMIT,
        ),
    )(mt, b2, h_bf, wd_bf, lbl3)

    denom = jnp.maximum(jnp.sum((shifted != 0).astype(jnp.float32)), 1.0)
    return jnp.sum(nll) / denom                                       # NLLLoss mean


if __name__ == "__main__":
    key = jax.random.PRNGKey(0)
    # batch, seq, hidden (decoder.in_features), feature_dim, vocab — small but multi-tile.
    B, S, H, F, V = 2, 16, 64, 32, 256
    k1, k2, k3, k4, k5, k6 = jax.random.split(key, 6)

    lm_hidden = jax.random.normal(k1, (B, S, H), jnp.float32)
    feature = jax.random.normal(k2, (B, F), jnp.float32)
    w_bil = 0.05 * jax.random.normal(k3, (H, F, H), jnp.float32)   # nn.Bilinear weight (H, F, H)
    b_bil = 0.05 * jax.random.normal(k4, (H,), jnp.float32)
    w_dec = 0.05 * jax.random.normal(k5, (V, H), jnp.float32)      # tied decoder Linear(H, V)
    lm_labels = jax.random.randint(k6, (B, S), 0, V, dtype=jnp.int32)

    # Small tiles so the test exercises multi-tile S and V grids (2 x 2 x 2).
    TS, TV = 8, 128

    # --- path 1: lm_labels is None -> return logits ---
    logits = jax.block_until_ready(
        bilinear_lm_logits(lm_hidden, feature, w_bil, b_bil, w_dec, ts=TS, tv=TV))

    # pure-JAX reference (f32)
    fused_ref = jnp.einsum('bi,oij,bsj->bso', feature, w_bil, lm_hidden) + b_bil
    logits_ref = jnp.einsum('bso,vo->bsv', fused_ref, w_dec)
    assert jnp.allclose(logits, logits_ref, rtol=3e-2, atol=3e-2), "logits mismatch"

    # --- path 2: lm_labels given -> return NLL loss ---
    loss = jax.block_until_ready(
        bilinear_lm_loss(lm_hidden, feature, lm_labels, w_bil, b_bil, w_dec, ts=TS, tv=TV))

    lg_ref = logits_ref[:, :-1, :].reshape(-1, V)
    lb_ref = lm_labels[:, 1:].reshape(-1)
    logp_ref = jax.nn.log_softmax(lg_ref, axis=-1)
    nll_ref = -jnp.take_along_axis(logp_ref, lb_ref[:, None], axis=-1)[:, 0]
    mask = (lb_ref != 0).astype(jnp.float32)
    loss_ref = jnp.sum(nll_ref * mask) / jnp.maximum(jnp.sum(mask), 1.0)
    assert jnp.allclose(loss, loss_ref, rtol=3e-2, atol=3e-2), "loss mismatch"

    # TODO(synk): allennlp metric accumulation (gen_accuracy_top_k) is stateful host-side
    # bookkeeping with no kernel equivalent; omitted.
    print("KERNEL_OK")
</pallas_src>

<mosaic_0001>
module attributes {stable_mosaic.version = 11 : i64} {
  func.func @_mt_kernel(%arg0: i32, %arg1: memref<2x32xf32, #tpu.memory_space<vmem>>, %arg2: memref<32x512xf32, #tpu.memory_space<vmem>>, %arg3: memref<2x512xbf16, #tpu.memory_space<vmem>>) attributes {dimension_semantics = [#tpu.dimension_semantics<parallel>], iteration_bounds = array<i64: 8>, scalar_prefetch = 0 : i64, scratch_operands = 0 : i64, tpu.core_type = #tpu.core_type<tc>, window_params = [{pipeline_mode = #tpu.pipeline_mode<synchronous>, transform_indices = @transform_0, window_bounds = array<i64: 2, 32>}, {transform_indices = @transform_1, window_bounds = array<i64: 32, 512>}, {transform_indices = @transform_2, window_bounds = array<i64: 2, 512>}]} {
    %c0 = arith.constant 0 : index
    %c0_0 = arith.constant 0 : index
    %0 = vector.load %arg1[%c0, %c0_0] : memref<2x32xf32, #tpu.memory_space<vmem>>, vector<2x32xf32>
    %c0_1 = arith.constant 0 : index
    %c0_2 = arith.constant 0 : index
    %1 = vector.load %arg2[%c0_1, %c0_2] : memref<32x512xf32, #tpu.memory_space<vmem>>, vector<32x512xf32>
    %cst = arith.constant dense<0.000000e+00> : vector<2x512xf32>
    %2 = tpu.matmul %0, %1, %cst {dimension_numbers = #tpu.dot_dimension_numbers<[1], [0], [0], [1], [0, 0, 1, 1], [], []>} : vector<2x32xf32>, vector<32x512xf32>, vector<2x512xf32> -> vector<2x512xf32>
    %3 = arith.truncf %2 : vector<2x512xf32> to vector<2x512xbf16>
    %c0_3 = arith.constant 0 : index
    %c0_4 = arith.constant 0 : index
    %4 = vector.load %arg3[%c0_3, %c0_4] : memref<2x512xbf16, #tpu.memory_space<vmem>>, vector<2x512xbf16>
    tpu.vector_store %arg3[%c0_3, %c0_4], %3 {strides = array<i32>} : memref<2x512xbf16, #tpu.memory_space<vmem>>, vector<2x512xbf16>,
    return
  }
  func.func @transform_0(%arg0: i32) -> (i32, i32) {
    %c0_i32 = arith.constant 0 : i32
    %c0_i32_0 = arith.constant 0 : i32
    %c0_i32_1 = arith.constant 0 : i32
    return %c0_i32, %c0_i32_0 : i32, i32
  }
  func.func @transform_1(%arg0: i32) -> (i32, i32) {
    %c0_i32 = arith.constant 0 : i32
    %c0_i32_0 = arith.constant 0 : i32
    return %c0_i32, %arg0 : i32, i32
  }
  func.func @transform_2(%arg0: i32) -> (i32, i32) {
    %c0_i32 = arith.constant 0 : i32
    %c0_i32_0 = arith.constant 0 : i32
    return %c0_i32, %arg0 : i32, i32
  }
}

</mosaic_0001>

<bundles_post_ra>
// kernel: tpu_custom_call.1
= control target key start
LH: loop header
LB: loop body
LE: loop exit
PB: predicated region body
PF: predicated region fallthrough
CT: control target
= control target key end

     0   :  { %7 = vsyncpa [#allocation3], 0  ;;  %s789_s0 = inlined_call_operand.hbm [shape: f32[2,32], index: 0, kind: input, shape index: {}]   ;;  %s790_s1 = inlined_call_operand.hbm [shape: f32[32,4096], index: 1, kind: input, shape index: {}]   ;;  %s791_s2 = inlined_call_operand.hbm [shape: bf16[2,4096], index: 2, kind: output, shape index: {}]  }
   0x1   :  { %8 = vsyncpa [#allocation6], 0 }
   0x2   :  { %10 = vsyncpa [#allocation6 + $0x1], 0 }
   0x3   :  { %11 = vsyncpa [#allocation4], 0 }
   0x4   :  { %13 = vsyncpa [#allocation4 + $0x1], 0  ;;  %s630_s9 = smov 0   ;;  %s632_s10 = smov 0  }
   0x5   :  { %s634_s11 = smov 0   ;;  %s636_s12 = smov 0  }
   0x6 LB: > { %s651_s13 = sadd.s32 4294967295, %s609_s12   ;;  %s399_s14 = sadd.s32 4294967294, %s609_s12   ;;  %s609_s12 = sphi %s636_s12, %s801_s12   ;;  %s605_s11 = sphi %s634_s11, %s800_s11   ;;  %s601_s10 = sphi %s632_s10, %s799_s10   ;;  %s597_s9 = sphi %s630_s9, %s798_s9  }
   0x7   : > { %s655_s15 = sadd.s32 1, %s609_s12   ;;  %s47_s16 = sadd.s32 1, %s605_s11 }
   0x8   : > { %s44_s17 = ssub.s32 %s609_s12, %s655_s15  ;;  %p54_p0 = scmp.ne.s32.totalorder %s605_s11, %s601_s10 }
   0x9   : > { %p45_p1 = scmp.eq.s32.totalorder %s44_s17, 0  ;;  %p55_p2 = scmp.eq.s32.totalorder %s609_s12, 0 }
   0xa   : > { %p60_p3 = scmp.ne.s32.totalorder %s601_s10, %s597_s9  ;;  %p61_p4 = scmp.eq.s32.totalorder %s651_s13, 0 }
   0xb   : > { %s667_s18 = scalar_select %p45_p1, %s605_s11, %s47_s16  }
   0xc   : > { %p669_p5 = por %p55_p2, %p54_p0  ;;  %p675_p6 = por %p61_p4, %p60_p3 }
   0xd   : > { %p84_p7 = scmp.eq.s32.totalorder %s651_s13, 7  ;;  %p90_p8 = scmp.eq.s32.totalorder %s399_s14, 7 }
   0xe   : > { %p400_p9 = scmp.ge.s32.totalorder %s609_s12, 1  ;;  %p97_p10 = scmp.lt.s32.totalorder %s609_s12, 9 }
   0xf   : > { %p682_p11 = por %p84_p7, %p54_p0  ;;  %p686_p12 = por %p90_p8, %p60_p3 }
  0x10   : > { %p690_p13 = pnand %p400_p9, %p97_p10  ;;  %s109_s26 = sshll.u32 %s789_s0, 4  ;;  %s110_s26 = int_to_ptr.hbm [resolvable:$true] %s109_s26 }
  0x11   : > { %s611_s27 = smov [#allocation2]   ;;  %p440_p2 = scmp.lt.s32.totalorder %s609_s12, 8 }
  0x12   : > { %p427_p1 = pneg %p690_p13  ;;  %s111_s28 = sshll.u32 %s611_s27, 4  ;;  %s112_s28 = int_to_ptr.vmem [resolvable:$true] %s111_s28 }
  0x13   : > { %s122_s29 = sand.u32 1, %s605_s11   ;;  %p705_p3 = pnand %p440_p2, %p669_p5 }
  0x14   : > { %p428_p0 = pnand %p427_p1, %p61_p4  ;;  %s403_s3 = sshll.u32 %s122_s29, 7 }
  0x15   : > { %s418_s4 = sshll.u32 %s609_s12, 5  ;;  %s126_s14 = scalar_lea.vmem [#allocation5], %s403_s3 }
  0x16   : > { %430 = dma.hbm_to_vmem [thread:$0]  (!%p428_p0), %s110_s26, 32, %s112_s28, [#allocation3]  }
  0x17   : > { %s131_s7 = scalar_lea.hbm %s790_s1, %s418_s4  ;;  %s134_s16 = sshll.u32 %s126_s14, 4  ;;  %s135_s16 = int_to_ptr.vmem [resolvable:$true] %s134_s16 }
  0x18   : > { %s132_s8 = sshll.u32 %s131_s7, 4  ;;  %s123_s17 = scalar_lea.sflag [#allocation6], %s122_s29  ;;  %s133_s8 = int_to_ptr.hbm [resolvable:$true] %s132_s8 }
  0x19   : > { %s509_s24 = sshra.s32 %s133_s8, 4  ;;  %p513_p7 = pneg %p705_p3  ;;  %s510_s24 = int_to_ptr.hbm [resolvable:$true] %s509_s24 }
  0x1a   : > { %s511_s19 = scalar_lea.hbm %s510_s24, 128  ;;  %s516_s27 = scalar_lea.hbm %s790_s1, 1024 }
  0x1b   : > { %p512_p5 = scmp.ne.s32.totalorder %s510_s24, %s511_s19  ;;  %p517_p10 = scmp.lt.s32.totalorder %s510_s24, %s790_s1 }
  0x1c   : > { %p518_p1 = scmp.lt.s32.totalorder %s516_s27, %s511_s19 }
  0x1d   : > { %p514_p8 = pnand %p513_p7, %p512_p5 }
  0x1e   : > { %p519_p0 = por %p518_p1, %p517_p10 }
  0x1f   : > { %p515_p9 = pneg %p514_p8 }
  0x21   : > { %p520_p2 = pnand %p519_p0, %p515_p9 }
  0x23   : > { %523 = shalt.err (!%p520_p2)
}
  0x24   : > { %s612_s29 = smov 4096   ;;  %s613_s3 = smov 512  }
  0x25   : > { %s614_s5 = smov 32   ;;  %146 = sbr.rel (%p690_p13) target bundleno = 197 (0xc5), region = 28 }
  0x26   : > { %434 = dma.hbm_to_vmem [thread:$0]  (!%p705_p3), %s133_s8, 2048, %s135_s16, %s123_s17, %s612_s29, %s613_s3, %s614_s5  }
  0x2a   : > { %584 = dma.done.wait (%p61_p4), [#allocation3], 32  }
  0x2b   : > { %586 = vsyncadd (%p61_p4), [#allocation3], 4294967264  ;;  %s730_s6 = sand.u32 1, %s601_s10  }
  0x2c   : > { %s408_s7 = sshll.u32 %s730_s6, 7  ;;  %s154_s14 = scalar_lea.sflag [#allocation6], %s730_s6 }
  0x2d   : > { %s734_s24 = scalar_lea.vmem [#allocation5], %s408_s7 }
  0x2e   : > { %588 = dma.done.wait (%p675_p6), %s154_s14, 2048  }
  0x2f   : > { %590 = vsyncadd (%p675_p6), %s154_s14, 4294965248  ;;  %v196_v0 = vld [vmem:[%s734_s24 + $0x70] sm:$0xff]  ;;  %v197_v1 = vld [vmem:[%s734_s24 + $0x78] sm:$0xff]  ;;  %vm198_vm0 = vcmask 261120   ;;  %s409_s20 = sshll.u32 %s730_s6, 2  ;;  %s415_s23 = sshll.u32 %s651_s13, 2 }
  0x30   : > { %v192_v2 = vld [vmem:[%s734_s24 + $0x50] sm:$0xff]  ;;  %254 = vmatpush.msra.mxu2 %v196_v0  ;;  %274 = vmatpush.msra.mxu3 %v197_v1  ;;  %v193_v3 = vld [vmem:[%s734_s24 + $0x58] sm:$0xff]  ;;  %v194_v4 = vld [vmem:[%s734_s24 + $0x60] sm:$0xff]  ;;  %s312_s16 = scalar_lea.hbm %s791_s2, %s415_s23  ;;  %vm289_vm1 = vcmask 1040384   ;;  %vm293_vm2 = vcmask 1042434   ;;  %s178_s17 = scalar_lea.vmem [#allocation7], %s409_s20 }
  0x31   : > { %v195_v5 = vld [vmem:[%s734_s24 + $0x68] sm:$0xff]  ;;  %214 = vmatpush.msra.mxu0 %v194_v4  ;;  %v188_v6 = vld [vmem:[%s734_s24 + $0x30] sm:$0xff]  ;;  %v189_v7 = vld [vmem:[%s734_s24 + $0x38] sm:$0xff]  ;;  %s314_s19 = sshll.u32 %s178_s17, 4  ;;  %s316_s25 = sshll.u32 %s312_s16, 4  ;;  %vm297_vm3 = vcmask 1041408   ;;  %s315_s19 = int_to_ptr.vmem [resolvable:$true] %s314_s19  ;;  %s317_s25 = int_to_ptr.hbm [resolvable:$true] %s316_s25 }
  0x32   : > { %234 = vmatpush.msra.mxu1 %v195_v5  ;;  %v190_v8 = vld [vmem:[%s734_s24 + $0x40] sm:$0xff]  ;;  %255 = vmatpush.msra.mxu2 %v192_v2  ;;  %v191_v9 = vld [vmem:[%s734_s24 + $0x48] sm:$0xff]  ;;  %v184_v10 = vld [vmem:[%s734_s24 + $0x10] sm:$0xff]  ;;  %s302_s13 = scalar_lea.sflag [#allocation4], %s730_s6  ;;  %s553_s26 = sshra.s32 %s317_s25, 4  ;;  %s554_s26 = int_to_ptr.hbm [resolvable:$true] %s553_s26 }
  0x33   : > { %275 = vmatpush.msra.mxu3 %v193_v3  ;;  %215 = vmatpush.msra.mxu0 %v190_v8  ;;  %v185_v11 = vld [vmem:[%s734_s24 + $0x18] sm:$0xff]  ;;  %v186_v12 = vld [vmem:[%s734_s24 + $0x20] sm:$0xff]  ;;  %v187_v13 = vld [vmem:[%s734_s24 + $0x28] sm:$0xff]  ;;  %s555_s27 = scalar_lea.hbm %s554_s26, 4  ;;  %s559_s29 = scalar_lea.hbm %s791_s2, 32 }
  0x34   : > { %235 = vmatpush.msra.mxu1 %v191_v9  ;;  %256 = vmatpush.msra.mxu2 %v188_v6  ;;  %v181_v14 = vld [vmem:[#allocation2] sm:$0x3]  ;;  %v182_v15 = vld [vmem:[%s734_s24] sm:$0xff]  ;;  %v183_v16 = vld [vmem:[%s734_s24 + $0x8] sm:$0xff]  ;;  %p556_p4 = scmp.ne.s32.totalorder %s554_s26, %s555_s27  ;;  %p560_p3 = scmp.lt.s32.totalorder %s554_s26, %s791_s2 }
  0x35   : > { %276 = vmatpush.msra.mxu3 %v189_v7  ;;  %216 = vmatpush.msra.mxu0 %v186_v12  ;;  %p561_p5 = scmp.lt.s32.totalorder %s559_s29, %s555_s27 }
  0x36   : > { %236 = vmatpush.msra.mxu1 %v187_v13  ;;  %257 = vmatpush.msra.mxu2 %v184_v10  ;;  %p557_p6 = pnand %p556_p4, %p682_p11 }
  0x37   : > { %277 = vmatpush.msra.mxu3 %v185_v11  ;;  %412 = vmatmul.msk.f32.vlgmr.msra.gmra.mxu2 %vm198_vm0, %v181_v14  ;;  %p562_p7 = por %p561_p5, %p560_p3 }
  0x38   : > { %413 = vmatmul.msk.f32.vlgmr.msra.gmra.mxu3 %vm198_vm0, %v181_v14  ;;  %217 = vmatpush.msra.mxu0 %v182_v15  ;;  %p558_p13 = pneg %p557_p6 }
  0x39   : > { %237 = vmatpush.msra.mxu1 %v183_v16  ;;  %410 = vmatmul.msk.f32.vlgmr.msra.gmra.mxu0 %vm198_vm0, %v181_v14 }
  0x3a   : > { %411 = vmatmul.msk.f32.vlgmr.msra.gmra.mxu1 %vm198_vm0, %v181_v14  ;;  %p563_p8 = pnand %p562_p7, %p558_p13 }
  0xb6   : > { %v219_v17 = vpop.f32.mrf.mxu0 }
  0xb7   : > { %v239_v18 = vpop.f32.mrf.mxu1 }
  0xb8   : > { %v282_v19 = vpack.c.bf16 %v239_v18, %v219_v17 }
  0xba   : > { %v259_v20 = vpop.f32.mrf.mxu2  ;;  %v286_v22 = vrot.slane %v282_v19, 3 }
  0xbb   : > { %v279_v21 = vpop.f32.mrf.mxu3 }
  0xbc   : > { %v283_v23 = vpack.c.bf16 %v279_v21, %v259_v20  ;;  %v292_v26 = vsel %vm289_vm1, %v282_v19, %v286_v22 }
  0xbe   : > { %v287_v24 = vrot.slane %v283_v23, 6  ;;  %v288_v25 = vrot.slane %v283_v23, 1 }
  0xc0   : > { %v296_v27 = vsel %vm293_vm2, %v287_v24, %v288_v25 }
  0xc1   : > { %v298_v28 = vsel %vm297_vm3, %v292_v26, %v296_v27 }
  0xc2   : > { %300 = vst [vmem:[%s178_s17] sm:$0xf] %v298_v28 }
  0xc3   : > { %566 = shalt.err (!%p563_p8)
}
  0xc4   : > { %425 = dma.vmem_to_hbm [thread:$0]  (%p682_p11), %s315_s19, 64, %s317_s25, %s302_s13  }
  0xc5 PF: > { %p442_p9 = scmp.ge.s32.totalorder %s609_s12, 2  ;;  %s328_s6 = sand.u32 1, %s597_s9  }
  0xc6   : > { %s329_s7 = scalar_lea.sflag [#allocation4], %s328_s6 }
  0xc7   : > { %p436_p10 = pnand %p442_p9, %p686_p12 }
  0xc9   : > { %p437_p1 = pneg %p436_p10 }
  0xcb   : > { %592 = dma.done.wait (%p437_p1), %s329_s7, 64  }
  0xcc   : > { %594 = vsyncadd (%p437_p1), %s329_s7, 4294967232  ;;  %p16_p0 = scmp.ge.s32.totalorder %s655_s15, 10   ;;  %s798_s9 = smov %s601_s10 }
  0xcd   : > { %s799_s10 = smov %s605_s11  ;;  %s800_s11 = smov %s667_s18 }
  0xce   : > { %s801_s12 = smov %s655_s15  ;;  %18 = sbr.rel (!%p16_p0) target bundleno = 6 (0x6), region = 78 }
  0xd3   :  { %335 = vsyncpa [#allocation3], 1 }
  0xd4   :  { %337 = vsyncpa [#allocation3 + $0x1], 1 }
  0xd5   :  { %338 = vsyncpa [#allocation6], 1 }
  0xd6   :  { %340 = vsyncpa [#allocation6 + $0x1], 1 }
  0xd7   :  { %341 = vsyncpa [#allocation4], 1 }
  0xd8   :  { %343 = vsyncpa [#allocation4 + $0x1], 1 }

</bundles_post_ra>
